<compile_context>
chip_gen: v7x
topology: tpu7x:2x2x1
jax: 0.10.0
libtpu: 0.0.40
codegen_flags: <defaults>
</compile_context>

<pallas_src>
import functools

import numpy as np
import jax
import jax.numpy as jnp
from jax.experimental import pallas as pl
from jax.experimental.pallas import tpu as pltpu


def _rd_loss_kernel(pred_ref, gt_ref, out_ref, *, range_list, scales):
    """Per-batch partial RD loss.

    pred_ref, gt_ref: (1, H, W) blocks in VMEM (one image per grid step).
    out_ref: (1, 8, 128) f32 block; the partial loss is broadcast into it
             (lane-dense store), wrapper reads [0, 0, 0].
    range_list: 8 static ints (shift per direction).
    scales: 8 static floats, scales[d] = 2 / (B * count_d)  (folds the factor-2
            of the single-denominator rewrite and the per-direction mean).
    """
    p = pred_ref[0].astype(jnp.float32)   # (H, W)
    g = gt_ref[0].astype(jnp.float32)
    H, W = p.shape
    r0, r1, r2, r3, r4, r5, r6, r7 = range_list

    def dir_term(slc_a, slc_b, scale):
        pa, pb = p[slc_a], p[slc_b]
        ga, gb = g[slc_a], g[slc_b]
        # (pa-pb)/(pa+pb) - (ga-gb)/(ga+gb) == 2*(pa*gb - pb*ga)/((pa+pb)*(ga+gb))
        # -> a single divide per direction; abs of the quotient is exact.
        num = pa * gb - pb * ga
        den = (pa + pb) * (ga + gb)
        return jnp.sum(jnp.abs(num / den)) * scale

    directions = (
        # rd_top: (bottom - top) / (bottom + top), shift r0
        ((slice(r0, None), slice(None)), (slice(None, H - r0), slice(None)), scales[0]),
        # rd_bottom: (top - bottom) / (top + bottom), shift r1
        ((slice(None, H - r1), slice(None)), (slice(r1, None), slice(None)), scales[1]),
        # rd_right: (left - right) / (left + right), shift r2
        ((slice(None), slice(None, W - r2)), (slice(None), slice(r2, None)), scales[2]),
        # rd_left: (right - left) / (right + left), shift r3
        ((slice(None), slice(r3, None)), (slice(None), slice(None, W - r3)), scales[3]),
        # rd_left_top: (bottom_right - left_top) / (...), shift r4
        ((slice(r4, None), slice(r4, None)), (slice(None, H - r4), slice(None, W - r4)), scales[4]),
        # rd_bottom_right: (bottom_right - left_top) / (...), shift r5
        ((slice(r5, None), slice(r5, None)), (slice(None, H - r5), slice(None, W - r5)), scales[5]),
        # rd_right_top: (bottom_left - right_top) / (...), shift r6
        ((slice(r6, None), slice(None, W - r6)), (slice(None, H - r6), slice(r6, None)), scales[6]),
        # rd_bottom_left: (right_top - bottom_left) / (...), shift r7
        ((slice(None, H - r7), slice(r7, None)), (slice(r7, None), slice(None, W - r7)), scales[7]),
    )

    s = jnp.float32(0.0)
    for slc_a, slc_b, scale in directions:
        s = s + dir_term(slc_a, slc_b, scale)

    out_ref[...] = jnp.full(out_ref.shape, s, dtype=out_ref.dtype)


@functools.partial(jax.jit, static_argnums=(2,))
def rd_loss_pallas(pred_nchw, gt_nchw, range_list):
    """pred/gt: (B, 1, H, W) in any float dtype. range_list: 8 static ints."""
    assert pred_nchw.shape == gt_nchw.shape and pred_nchw.shape[1] == 1
    B, _, H, W = pred_nchw.shape
    r = tuple(int(x) for x in range_list)
    assert len(r) == 8 and all(0 < ri < min(H, W) for ri in r), r

    # Keep the original dtype in HBM; the kernel casts to f32 on the VPU.
    pred = pred_nchw.reshape(B, H, W)
    gt = gt_nchw.reshape(B, H, W)

    counts = (
        (H - r[0]) * W, (H - r[1]) * W,
        H * (W - r[2]), H * (W - r[3]),
        (H - r[4]) * (W - r[4]), (H - r[5]) * (W - r[5]),
        (H - r[6]) * (W - r[6]), (H - r[7]) * (W - r[7]),
    )
    scales = tuple(2.0 / (B * c) for c in counts)

    kernel = functools.partial(_rd_loss_kernel, range_list=r, scales=scales)

    partials = pl.pallas_call(
        kernel,
        out_shape=jax.ShapeDtypeStruct((B, 8, 128), jnp.float32),
        grid_spec=pltpu.PrefetchScalarGridSpec(
            num_scalar_prefetch=0,
            grid=(B,),
            in_specs=[
                pl.BlockSpec((1, H, W), lambda b: (b, 0, 0)),
                pl.BlockSpec((1, H, W), lambda b: (b, 0, 0)),
            ],
            out_specs=pl.BlockSpec((1, 8, 128), lambda b: (b, 0, 0)),
        ),
        compiler_params=pltpu.CompilerParams(
            dimension_semantics=("parallel",),
        ),
    )(pred, gt)

    return jnp.sum(partials[:, 0, 0])


def rd_loss_ref(pred_nchw, gt_nchw, range_list):
    """Pure-JAX reference matching the PyTorch forward semantics."""
    p = pred_nchw.astype(jnp.float32)
    g = gt_nchw.astype(jnp.float32)
    r = [int(x) for x in range_list]

    def rd(x, slc_a, slc_b):
        a, b = x[slc_a], x[slc_b]
        return (a - b) / (a + b)

    slabs = [
        (np.s_[:, :, r[0]:, :], np.s_[:, :, :-r[0], :]),            # rd_top
        (np.s_[:, :, :-r[1], :], np.s_[:, :, r[1]:, :]),            # rd_bottom
        (np.s_[:, :, :, :-r[2]], np.s_[:, :, :, r[2]:]),            # rd_right
        (np.s_[:, :, :, r[3]:], np.s_[:, :, :, :-r[3]]),            # rd_left
        (np.s_[:, :, r[4]:, r[4]:], np.s_[:, :, :-r[4], :-r[4]]),   # rd_left_top
        (np.s_[:, :, r[5]:, r[5]:], np.s_[:, :, :-r[5], :-r[5]]),   # rd_bottom_right
        (np.s_[:, :, r[6]:, :-r[6]], np.s_[:, :, :-r[6], r[6]:]),   # rd_right_top
        (np.s_[:, :, :-r[7], r[7]:], np.s_[:, :, r[7]:, :-r[7]]),   # rd_bottom_left
    ]
    loss = jnp.float32(0.0)
    for sa, sb in slabs:
        loss = loss + jnp.mean(jnp.abs(rd(p, sa, sb) - rd(g, sa, sb)))
    return loss


if __name__ == "__main__":
    B, C, H, W = 2, 1, 16, 16
    key = jax.random.PRNGKey(0)
    k1, k2 = jax.random.split(key)
    # Positive "depth maps" so the (a+b) denominators never vanish.
    pred = jax.random.uniform(k1, (B, C, H, W), jnp.float32, minval=0.1, maxval=1.1)
    gt = jax.random.uniform(k2, (B, C, H, W), jnp.float32, minval=0.1, maxval=1.1)

    # Deterministic stand-in for `np.random.randint(1, range+1, size=8)` with range=3.
    rng = np.random.default_rng(0)
    range_list = tuple(int(x) for x in rng.integers(1, 4, size=8))

    loss = jax.block_until_ready(rd_loss_pallas(pred, gt, range_list))
    ref = jax.block_until_ready(rd_loss_ref(pred, gt, range_list))
    assert np.allclose(np.asarray(loss), np.asarray(ref), rtol=1e-4, atol=1e-5), (loss, ref)

    print("KERNEL_OK")
</pallas_src>

<mosaic_0001>
module attributes {stable_mosaic.version = 11 : i64} {
  func.func @_rd_loss_kernel(%arg0: i32, %arg1: memref<1x16x16xf32, #tpu.memory_space<vmem>>, %arg2: memref<1x16x16xf32, #tpu.memory_space<vmem>>, %arg3: memref<1x8x128xf32, #tpu.memory_space<vmem>>) attributes {dimension_semantics = [#tpu.dimension_semantics<parallel>], iteration_bounds = array<i64: 2>, scalar_prefetch = 0 : i64, scratch_operands = 0 : i64, tpu.core_type = #tpu.core_type<tc>, window_params = [{transform_indices = @transform_0, window_bounds = array<i64: 1, 16, 16>}, {transform_indices = @transform_1, window_bounds = array<i64: 1, 16, 16>}, {transform_indices = @transform_2, window_bounds = array<i64: 1, 8, 128>}]} {
    %c0 = arith.constant 0 : index
    %c0_0 = arith.constant 0 : index
    %c0_1 = arith.constant 0 : index
    %0 = vector.load %arg1[%c0, %c0_0, %c0_1] : memref<1x16x16xf32, #tpu.memory_space<vmem>>, vector<1x16x16xf32>
    %1 = vector.shape_cast %0 : vector<1x16x16xf32> to vector<16x16xf32>
    %c0_2 = arith.constant 0 : index
    %c0_3 = arith.constant 0 : index
    %c0_4 = arith.constant 0 : index
    %2 = vector.load %arg2[%c0_2, %c0_3, %c0_4] : memref<1x16x16xf32, #tpu.memory_space<vmem>>, vector<1x16x16xf32>
    %3 = vector.shape_cast %2 : vector<1x16x16xf32> to vector<16x16xf32>
    %4 = vector.extract_strided_slice %1 {offsets = [3, 0], sizes = [13, 16], strides = [1, 1]} : vector<16x16xf32> to vector<13x16xf32>
    %5 = vector.extract_strided_slice %1 {offsets = [0, 0], sizes = [13, 16], strides = [1, 1]} : vector<16x16xf32> to vector<13x16xf32>
    %6 = vector.extract_strided_slice %3 {offsets = [3, 0], sizes = [13, 16], strides = [1, 1]} : vector<16x16xf32> to vector<13x16xf32>
    %7 = vector.extract_strided_slice %3 {offsets = [0, 0], sizes = [13, 16], strides = [1, 1]} : vector<16x16xf32> to vector<13x16xf32>
    %8 = arith.mulf %4, %7 : vector<13x16xf32>
    %9 = arith.mulf %5, %6 : vector<13x16xf32>
    %10 = arith.subf %8, %9 : vector<13x16xf32>
    %11 = arith.addf %4, %5 : vector<13x16xf32>
    %12 = arith.addf %6, %7 : vector<13x16xf32>
    %13 = arith.mulf %11, %12 : vector<13x16xf32>
    %14 = arith.divf %10, %13 : vector<13x16xf32>
    %15 = math.absf %14 : vector<13x16xf32>
    %16 = vector.shape_cast %15 : vector<13x16xf32> to vector<1x13x16xf32>
    %cst = arith.constant dense<0.000000e+00> : vector<1xf32>
    %17 = vector.multi_reduction <add>, %16, %cst [1, 2] : vector<1x13x16xf32> to vector<1xf32>
    %18 = vector.shape_cast %17 : vector<1xf32> to vector<1x1x1xf32>
    %19 = vector.extract %18[0, 0, 0] : f32 from vector<1x1x1xf32>
    %cst_5 = arith.constant 0.00480769249 : f32
    %20 = arith.mulf %19, %cst_5 : f32
    %cst_6 = arith.constant 0.000000e+00 : f32
    %21 = arith.addf %cst_6, %20 : f32
    %22 = vector.extract_strided_slice %1 {offsets = [0, 0], sizes = [14, 16], strides = [1, 1]} : vector<16x16xf32> to vector<14x16xf32>
    %23 = vector.extract_strided_slice %1 {offsets = [2, 0], sizes = [14, 16], strides = [1, 1]} : vector<16x16xf32> to vector<14x16xf32>
    %24 = vector.extract_strided_slice %3 {offsets = [0, 0], sizes = [14, 16], strides = [1, 1]} : vector<16x16xf32> to vector<14x16xf32>
    %25 = vector.extract_strided_slice %3 {offsets = [2, 0], sizes = [14, 16], strides = [1, 1]} : vector<16x16xf32> to vector<14x16xf32>
    %26 = arith.mulf %22, %25 : vector<14x16xf32>
    %27 = arith.mulf %23, %24 : vector<14x16xf32>
    %28 = arith.subf %26, %27 : vector<14x16xf32>
    %29 = arith.addf %22, %23 : vector<14x16xf32>
    %30 = arith.addf %24, %25 : vector<14x16xf32>
    %31 = arith.mulf %29, %30 : vector<14x16xf32>
    %32 = arith.divf %28, %31 : vector<14x16xf32>
    %33 = math.absf %32 : vector<14x16xf32>
    %34 = vector.shape_cast %33 : vector<14x16xf32> to vector<1x14x16xf32>
    %cst_7 = arith.constant dense<0.000000e+00> : vector<1xf32>
    %35 = vector.multi_reduction <add>, %34, %cst_7 [1, 2] : vector<1x14x16xf32> to vector<1xf32>
    %36 = vector.shape_cast %35 : vector<1xf32> to vector<1x1x1xf32>
    %37 = vector.extract %36[0, 0, 0] : f32 from vector<1x1x1xf32>
    %cst_8 = arith.constant 0.00446428591 : f32
    %38 = arith.mulf %37, %cst_8 : f32
    %39 = arith.addf %21, %38 : f32
    %40 = vector.extract_strided_slice %1 {offsets = [0, 0], sizes = [16, 14], strides = [1, 1]} : vector<16x16xf32> to vector<16x14xf32>
    %41 = vector.extract_strided_slice %1 {offsets = [0, 2], sizes = [16, 14], strides = [1, 1]} : vector<16x16xf32> to vector<16x14xf32>
    %42 = vector.extract_strided_slice %3 {offsets = [0, 0], sizes = [16, 14], strides = [1, 1]} : vector<16x16xf32> to vector<16x14xf32>
    %43 = vector.extract_strided_slice %3 {offsets = [0, 2], sizes = [16, 14], strides = [1, 1]} : vector<16x16xf32> to vector<16x14xf32>
    %44 = arith.mulf %40, %43 : vector<16x14xf32>
    %45 = arith.mulf %41, %42 : vector<16x14xf32>
    %46 = arith.subf %44, %45 : vector<16x14xf32>
    %47 = arith.addf %40, %41 : vector<16x14xf32>
    %48 = arith.addf %42, %43 : vector<16x14xf32>
    %49 = arith.mulf %47, %48 : vector<16x14xf32>
    %50 = arith.divf %46, %49 : vector<16x14xf32>
    %51 = math.absf %50 : vector<16x14xf32>
    %52 = vector.shape_cast %51 : vector<16x14xf32> to vector<1x16x14xf32>
    %cst_9 = arith.constant dense<0.000000e+00> : vector<1xf32>
    %53 = vector.multi_reduction <add>, %52, %cst_9 [1, 2] : vector<1x16x14xf32> to vector<1xf32>
    %54 = vector.shape_cast %53 : vector<1xf32> to vector<1x1x1xf32>
    %55 = vector.extract %54[0, 0, 0] : f32 from vector<1x1x1xf32>
    %cst_10 = arith.constant 0.00446428591 : f32
    %56 = arith.mulf %55, %cst_10 : f32
    %57 = arith.addf %39, %56 : f32
    %58 = vector.extract_strided_slice %1 {offsets = [0, 1], sizes = [16, 15], strides = [1, 1]} : vector<16x16xf32> to vector<16x15xf32>
    %59 = vector.extract_strided_slice %1 {offsets = [0, 0], sizes = [16, 15], strides = [1, 1]} : vector<16x16xf32> to vector<16x15xf32>
    %60 = vector.extract_strided_slice %3 {offsets = [0, 1], sizes = [16, 15], strides = [1, 1]} : vector<16x16xf32> to vector<16x15xf32>
    %61 = vector.extract_strided_slice %3 {offsets = [0, 0], sizes = [16, 15], strides = [1, 1]} : vector<16x16xf32> to vector<16x15xf32>
    %62 = arith.mulf %58, %61 : vector<16x15xf32>
    %63 = arith.mulf %59, %60 : vector<16x15xf32>
    %64 = arith.subf %62, %63 : vector<16x15xf32>
    %65 = arith.addf %58, %59 : vector<16x15xf32>
    %66 = arith.addf %60, %61 : vector<16x15xf32>
    %67 = arith.mulf %65, %66 : vector<16x15xf32>
    %68 = arith.divf %64, %67 : vector<16x15xf32>
    %69 = math.absf %68 : vector<16x15xf32>
    %70 = vector.shape_cast %69 : vector<16x15xf32> to vector<1x16x15xf32>
    %cst_11 = arith.constant dense<0.000000e+00> : vector<1xf32>
    %71 = vector.multi_reduction <add>, %70, %cst_11 [1, 2] : vector<1x16x15xf32> to vector<1xf32>
    %72 = vector.shape_cast %71 : vector<1xf32> to vector<1x1x1xf32>
    %73 = vector.extract %72[0, 0, 0] : f32 from vector<1x1x1xf32>
    %cst_12 = arith.constant 0.00416666688 : f32
    %74 = arith.mulf %73, %cst_12 : f32
    %75 = arith.addf %57, %74 : f32
    %76 = vector.extract_strided_slice %1 {offsets = [1, 1], sizes = [15, 15], strides = [1, 1]} : vector<16x16xf32> to vector<15x15xf32>
    %77 = vector.extract_strided_slice %1 {offsets = [0, 0], sizes = [15, 15], strides = [1, 1]} : vector<16x16xf32> to vector<15x15xf32>
    %78 = vector.extract_strided_slice %3 {offsets = [1, 1], sizes = [15, 15], strides = [1, 1]} : vector<16x16xf32> to vector<15x15xf32>
    %79 = vector.extract_strided_slice %3 {offsets = [0, 0], sizes = [15, 15], strides = [1, 1]} : vector<16x16xf32> to vector<15x15xf32>
    %80 = arith.mulf %76, %79 : vector<15x15xf32>
    %81 = arith.mulf %77, %78 : vector<15x15xf32>
    %82 = arith.subf %80, %81 : vector<15x15xf32>
    %83 = arith.addf %76, %77 : vector<15x15xf32>
    %84 = arith.addf %78, %79 : vector<15x15xf32>
    %85 = arith.mulf %83, %84 : vector<15x15xf32>
    %86 = arith.divf %82, %85 : vector<15x15xf32>
    %87 = math.absf %86 : vector<15x15xf32>
    %88 = vector.shape_cast %87 : vector<15x15xf32> to vector<1x15x15xf32>
    %cst_13 = arith.constant dense<0.000000e+00> : vector<1xf32>
    %89 = vector.multi_reduction <add>, %88, %cst_13 [1, 2] : vector<1x15x15xf32> to vector<1xf32>
    %90 = vector.shape_cast %89 : vector<1xf32> to vector<1x1x1xf32>
    %91 = vector.extract %90[0, 0, 0] : f32 from vector<1x1x1xf32>
    %cst_14 = arith.constant 0.00444444455 : f32
    %92 = arith.mulf %91, %cst_14 : f32
    %93 = arith.addf %75, %92 : f32
    %94 = vector.extract_strided_slice %1 {offsets = [1, 1], sizes = [15, 15], strides = [1, 1]} : vector<16x16xf32> to vector<15x15xf32>
    %95 = vector.extract_strided_slice %1 {offsets = [0, 0], sizes = [15, 15], strides = [1, 1]} : vector<16x16xf32> to vector<15x15xf32>
    %96 = vector.extract_strided_slice %3 {offsets = [1, 1], sizes = [15, 15], strides = [1, 1]} : vector<16x16xf32> to vector<15x15xf32>
    %97 = vector.extract_strided_slice %3 {offsets = [0, 0], sizes = [15, 15], strides = [1, 1]} : vector<16x16xf32> to vector<15x15xf32>
    %98 = arith.mulf %94, %97 : vector<15x15xf32>
    %99 = arith.mulf %95, %96 : vector<15x15xf32>
    %100 = arith.subf %98, %99 : vector<15x15xf32>
    %101 = arith.addf %94, %95 : vector<15x15xf32>
    %102 = arith.addf %96, %97 : vector<15x15xf32>
    %103 = arith.mulf %101, %102 : vector<15x15xf32>
    %104 = arith.divf %100, %103 : vector<15x15xf32>
    %105 = math.absf %104 : vector<15x15xf32>
    %106 = vector.shape_cast %105 : vector<15x15xf32> to vector<1x15x15xf32>
    %cst_15 = arith.constant dense<0.000000e+00> : vector<1xf32>
    %107 = vector.multi_reduction <add>, %106, %cst_15 [1, 2] : vector<1x15x15xf32> to vector<1xf32>
    %108 = vector.shape_cast %107 : vector<1xf32> to vector<1x1x1xf32>
    %109 = vector.extract %108[0, 0, 0] : f32 from vector<1x1x1xf32>
    %cst_16 = arith.constant 0.00444444455 : f32
    %110 = arith.mulf %109, %cst_16 : f32
    %111 = arith.addf %93, %110 : f32
    %112 = vector.extract_strided_slice %1 {offsets = [1, 0], sizes = [15, 15], strides = [1, 1]} : vector<16x16xf32> to vector<15x15xf32>
    %113 = vector.extract_strided_slice %1 {offsets = [0, 1], sizes = [15, 15], strides = [1, 1]} : vector<16x16xf32> to vector<15x15xf32>
    %114 = vector.extract_strided_slice %3 {offsets = [1, 0], sizes = [15, 15], strides = [1, 1]} : vector<16x16xf32> to vector<15x15xf32>
    %115 = vector.extract_strided_slice %3 {offsets = [0, 1], sizes = [15, 15], strides = [1, 1]} : vector<16x16xf32> to vector<15x15xf32>
    %116 = arith.mulf %112, %115 : vector<15x15xf32>
    %117 = arith.mulf %113, %114 : vector<15x15xf32>
    %118 = arith.subf %116, %117 : vector<15x15xf32>
    %119 = arith.addf %112, %113 : vector<15x15xf32>
    %120 = arith.addf %114, %115 : vector<15x15xf32>
    %121 = arith.mulf %119, %120 : vector<15x15xf32>
    %122 = arith.divf %118, %121 : vector<15x15xf32>
    %123 = math.absf %122 : vector<15x15xf32>
    %124 = vector.shape_cast %123 : vector<15x15xf32> to vector<1x15x15xf32>
    %cst_17 = arith.constant dense<0.000000e+00> : vector<1xf32>
    %125 = vector.multi_reduction <add>, %124, %cst_17 [1, 2] : vector<1x15x15xf32> to vector<1xf32>
    %126 = vector.shape_cast %125 : vector<1xf32> to vector<1x1x1xf32>
    %127 = vector.extract %126[0, 0, 0] : f32 from vector<1x1x1xf32>
    %cst_18 = arith.constant 0.00444444455 : f32
    %128 = arith.mulf %127, %cst_18 : f32
    %129 = arith.addf %111, %128 : f32
    %130 = vector.extract_strided_slice %1 {offsets = [0, 1], sizes = [15, 15], strides = [1, 1]} : vector<16x16xf32> to vector<15x15xf32>
    %131 = vector.extract_strided_slice %1 {offsets = [1, 0], sizes = [15, 15], strides = [1, 1]} : vector<16x16xf32> to vector<15x15xf32>
    %132 = vector.extract_strided_slice %3 {offsets = [0, 1], sizes = [15, 15], strides = [1, 1]} : vector<16x16xf32> to vector<15x15xf32>
    %133 = vector.extract_strided_slice %3 {offsets = [1, 0], sizes = [15, 15], strides = [1, 1]} : vector<16x16xf32> to vector<15x15xf32>
    %134 = arith.mulf %130, %133 : vector<15x15xf32>
    %135 = arith.mulf %131, %132 : vector<15x15xf32>
    %136 = arith.subf %134, %135 : vector<15x15xf32>
    %137 = arith.addf %130, %131 : vector<15x15xf32>
    %138 = arith.addf %132, %133 : vector<15x15xf32>
    %139 = arith.mulf %137, %138 : vector<15x15xf32>
    %140 = arith.divf %136, %139 : vector<15x15xf32>
    %141 = math.absf %140 : vector<15x15xf32>
    %142 = vector.shape_cast %141 : vector<15x15xf32> to vector<1x15x15xf32>
    %cst_19 = arith.constant dense<0.000000e+00> : vector<1xf32>
    %143 = vector.multi_reduction <add>, %142, %cst_19 [1, 2] : vector<1x15x15xf32> to vector<1xf32>
    %144 = vector.shape_cast %143 : vector<1xf32> to vector<1x1x1xf32>
    %145 = vector.extract %144[0, 0, 0] : f32 from vector<1x1x1xf32>
    %cst_20 = arith.constant 0.00444444455 : f32
    %146 = arith.mulf %145, %cst_20 : f32
    %147 = arith.addf %129, %146 : f32
    %148 = vector.broadcast %147 : f32 to vector<1x8x128xf32>
    %c0_21 = arith.constant 0 : index
    %c0_22 = arith.constant 0 : index
    %c0_23 = arith.constant 0 : index
    %149 = vector.load %arg3[%c0_21, %c0_22, %c0_23] : memref<1x8x128xf32, #tpu.memory_space<vmem>>, vector<1x8x128xf32>
    tpu.vector_store %arg3[%c0_21, %c0_22, %c0_23], %148 {strides = array<i32>} : memref<1x8x128xf32, #tpu.memory_space<vmem>>, vector<1x8x128xf32>,
    return
  }
  func.func @transform_0(%arg0: i32) -> (i32, i32, i32) {
    %c0_i32 = arith.constant 0 : i32
    %c0_i32_0 = arith.constant 0 : i32
    %c0_i32_1 = arith.constant 0 : i32
    return %arg0, %c0_i32, %c0_i32_0 : i32, i32, i32
  }
  func.func @transform_1(%arg0: i32) -> (i32, i32, i32) {
    %c0_i32 = arith.constant 0 : i32
    %c0_i32_0 = arith.constant 0 : i32
    %c0_i32_1 = arith.constant 0 : i32
    return %arg0, %c0_i32, %c0_i32_0 : i32, i32, i32
  }
  func.func @transform_2(%arg0: i32) -> (i32, i32, i32) {
    %c0_i32 = arith.constant 0 : i32
    %c0_i32_0 = arith.constant 0 : i32
    %c0_i32_1 = arith.constant 0 : i32
    return %arg0, %c0_i32, %c0_i32_0 : i32, i32, i32
  }
}

</mosaic_0001>

<bundles_post_ra>
// kernel: rd_loss_pallas.1
= control target key start
LH: loop header
LB: loop body
LE: loop exit
PB: predicated region body
PF: predicated region fallthrough
CT: control target
= control target key end

     0   :  { %7 = vsyncpa [#allocation3], 0  ;;  %s1344_s0 = inlined_call_operand.hbm [shape: f32[2,16,16], index: 0, kind: input, shape index: {}]   ;;  %s1345_s1 = inlined_call_operand.hbm [shape: f32[2,16,16], index: 1, kind: input, shape index: {}]   ;;  %s1346_s2 = inlined_call_operand.vmem [shape: f32[2,8,128], index: 2, kind: output, shape index: {}]  }
   0x1   :  { %9 = vsyncpa [#allocation3 + $0x1], 0 }
   0x2   :  { %10 = vsyncpa [#allocation5], 0 }
   0x3   :  { %12 = vsyncpa [#allocation5 + $0x1], 0  ;;  %s985_s9 = smov 0   ;;  %s987_s10 = smov 0  }
   0x4   :  { %s989_s11 = smov 0   ;;  %s991_s12 = smov 0  }
   0x5 LB: > { %s1004_s13 = sadd.s32 4294967295, %s960_s12   ;;  %s1007_s14 = sadd.s32 1, %s960_s12   ;;  %s960_s12 = sphi %s991_s12, %s1356_s12   ;;  %s956_s11 = sphi %s989_s11, %s1355_s11   ;;  %s952_s10 = sphi %s987_s10, %s1354_s10   ;;  %s948_s9 = sphi %s985_s9, %s1353_s9  }
   0x6   : > { %s22_s15 = ssub.s32 %s960_s12, %s1007_s14  ;;  %s25_s16 = sadd.s32 1, %s956_s11 }
   0x7   : > { %p23_p0 = scmp.eq.s32.totalorder %s22_s15, 0  ;;  %p32_p1 = scmp.ne.s32.totalorder %s956_s11, %s952_s10 }
   0x8   : > { %p33_p2 = scmp.eq.s32.totalorder %s960_s12, 0  ;;  %p38_p3 = scmp.ne.s32.totalorder %s952_s10, %s948_s9 }
   0x9   : > { %s1017_s17 = scalar_select %p23_p0, %s956_s11, %s25_s16  }
   0xa   : > { %p34_p4 = por %p33_p2, %p32_p1  ;;  %p39_p5 = scmp.eq.s32.totalorder %s1004_s13, 0 }
   0xb   : > { %p795_p6 = scmp.lt.s32.totalorder %s960_s12, 2  ;;  %s1026_s19 = sand.u32 1, %s956_s11  }
   0xc   : > { %p1021_p7 = por %p39_p5, %p38_p3  ;;  %s756_s20 = sshll.u32 %s1026_s19, 4 }
   0xd   : > { %s768_s21 = sshll.u32 %s960_s12, 8  ;;  %s118_s25 = scalar_lea.vmem [#allocation2], %s756_s20 }
   0xe   : > { %s1348_s18 = scalar_select %p1021_p7, 1, 0 }
   0xf   : > { %s1035_s24 = scalar_lea.hbm %s1344_s0, %s768_s21  ;;  %s125_s26 = sshll.u32 %s118_s25, 4  ;;  %s1039_s26 = int_to_ptr.vmem [resolvable:$true] %s125_s26 }
  0x10   : > { %p1041_p8 = pnand %p795_p6, %p34_p4  ;;  %s115_s28 = scalar_lea.sflag [#allocation3], %s1026_s19 }
  0x11   : > { %s862_s29 = scalar_lea.hbm %s1035_s24, 256  ;;  %s867_s4 = scalar_lea.hbm %s1344_s0, 512 }
  0x12   : > { %p863_p10 = scmp.ne.s32.totalorder %s1035_s24, %s862_s29  ;;  %p864_p11 = pneg %p1041_p8 }
  0x13   : > { %p868_p0 = scmp.lt.u32.totalorder %s1035_s24, %s1344_s0  ;;  %p869_p1 = scmp.lt.u32.totalorder %s867_s4, %s862_s29 }
  0x14   : > { %p865_p12 = pnand %p864_p11, %p863_p10  ;;  %p871_p3 = scmp.lt.u32.totalorder %s862_s29, %s1035_s24 }
  0x15   : > { %p870_p2 = por %p869_p1, %p868_p0 }
  0x16   : > { %p866_p13 = pneg %p865_p12 }
  0x17   : > { %p872_p4 = por %p871_p3, %p870_p2 }
  0x19   : > { %p873_p5 = pnand %p872_p4, %p866_p13 }
  0x1b   : > { %876 = shalt.err (!%p873_p5)
}
  0x1c   : > { %s877_s7 = scalar_lea.vmem %s1039_s26, 256  ;;  %s962_s8 = smov [#allocation2]  }
  0x1d   : > { %p878_p6 = scmp.ne.s32.totalorder %s1039_s26, %s877_s7  ;;  %s882_s9 = sshll.u32 %s962_s8, 4  ;;  %s883_s9 = int_to_ptr.vmem [resolvable:$false] %s882_s9 }
  0x1e   : > { %s884_s15 = scalar_lea.vmem %s883_s9, 512  ;;  %p885_p9 = scmp.lt.s32.totalorder %s1039_s26, %s883_s9 }
  0x1f   : > { %p880_p10 = pnand %p878_p6, %p864_p11  ;;  %p886_p0 = scmp.lt.s32.totalorder %s884_s15, %s877_s7 }
  0x21   : > { %p881_p12 = pneg %p880_p10  ;;  %p887_p1 = por %p886_p0, %p885_p9 }
  0x23   : > { %p888_p2 = pnand %p887_p1, %p881_p12 }
  0x25   : > { %891 = shalt.err (!%p888_p2)
}
  0x26   : > { %s963_s16 = smov 128   ;;  %s964_s22 = smov 8  }
  0x27   : > { %791 = dma.hbm_to_vmem [thread:$0]  (!%p1041_p8), %s1035_s24, 256, %s1039_s26, %s115_s28, %s963_s16, %s963_s16, %s964_s22  }
  0x28   : > { %p154_p9 = scmp.lt.s32.totalorder %s960_s12, 3  ;;  %s1083_s29 = scalar_lea.hbm %s1345_s1, %s768_s21 }
  0x29   : > { %p1350_p13 = scmp.ge.s32.totalorder %s960_s12, 1  ;;  %s139_s3 = scalar_lea.vmem [#allocation4], %s756_s20 }
  0x2a   : > { %s146_s4 = sshll.u32 %s139_s3, 4  ;;  %s136_s24 = scalar_lea.sflag [#allocation5], %s1026_s19  ;;  %s1093_s4 = int_to_ptr.vmem [resolvable:$true] %s146_s4 }
  0x2b   : > { %p1087_p3 = pnand %p1350_p13, %p154_p9  ;;  %s892_s26 = scalar_lea.hbm %s1083_s29, 256 }
  0x2c   : > { %p893_p4 = scmp.ne.s32.totalorder %s1083_s29, %s892_s26  ;;  %s897_s28 = scalar_lea.hbm %s1345_s1, 512 }
  0x2d   : > { %p898_p10 = scmp.lt.u32.totalorder %s1083_s29, %s1345_s1  ;;  %p899_p12 = scmp.lt.u32.totalorder %s897_s28, %s892_s26 }
  0x2e   : > { %p895_p5 = pnand %p893_p4, %p864_p11  ;;  %p901_p1 = scmp.lt.u32.totalorder %s892_s26, %s1083_s29 }
  0x2f   : > { %p900_p0 = por %p899_p12, %p898_p10 }
  0x30   : > { %p896_p6 = pneg %p895_p5 }
  0x31   : > { %p902_p2 = por %p901_p1, %p900_p0 }
  0x33   : > { %p903_p9 = pnand %p902_p2, %p896_p6 }
  0x35   : > { %906 = shalt.err (!%p903_p9)
}
  0x36   : > { %s907_s20 = scalar_lea.vmem %s1093_s4, 256  ;;  %s965_s7 = smov [#allocation4]  }
  0x37   : > { %p908_p13 = scmp.ne.s32.totalorder %s1093_s4, %s907_s20  ;;  %s912_s8 = sshll.u32 %s965_s7, 4  ;;  %s913_s8 = int_to_ptr.vmem [resolvable:$false] %s912_s8 }
  0x38   : > { %s914_s9 = scalar_lea.vmem %s913_s8, 512  ;;  %p915_p7 = scmp.lt.s32.totalorder %s1093_s4, %s913_s8 }
  0x39   : > { %p910_p4 = pnand %p908_p13, %p864_p11  ;;  %p916_p10 = scmp.lt.s32.totalorder %s914_s9, %s907_s20 }
  0x3b   : > { %p911_p5 = pneg %p910_p4  ;;  %p917_p12 = por %p916_p10, %p915_p7 }
  0x3d   : > { %p918_p0 = pnand %p917_p12, %p911_p5 }
  0x3f   : > { %921 = shalt.err (!%p918_p0)
}
  0x40   : > { %794 = dma.hbm_to_vmem [thread:$0]  (!%p1041_p8), %s1083_s29, 256, %s1093_s4, %s136_s24, %s963_s16, %s963_s16, %s964_s22  }
  0x41   : > { %158 = sbr.rel (%p1087_p3) target bundleno = 674 (0x2a2), region = 28  ;;  %s160_s15 = sand.u32 (!%p1087_p3), 1, %s952_s10  }
  0x42   : > { %s763_s23 = sshll.u32 (!%p1087_p3), %s160_s15, 4  ;;  %s161_s25 = scalar_lea.sflag (!%p1087_p3), [#allocation3], %s160_s15 }
  0x43   : > { %s164_s3 = scalar_lea.vmem (!%p1087_p3), [#allocation2], %s763_s23  ;;  %p1352_p7 = scmp.ne.s32.totalorder (!%p1087_p3), %s1348_s18, 0 }
  0x48   : > { %939 = dma.done.wait (%p1352_p7), %s161_s25, 256  }
  0x49   : > { %941 = vsyncadd (%p1352_p7), %s161_s25, 4294967040  ;;  %s170_s27 = scalar_lea.sflag [#allocation5], %s160_s15  ;;  %s173_s19 = scalar_lea.vmem [#allocation4], %s763_s23 }
  0x4a   : > { %943 = dma.done.wait (%p1352_p7), %s170_s27, 256  }
  0x4b   : > { %945 = vsyncadd (%p1352_p7), %s170_s27, 4294967040  ;;  %v1135_v0 = vld [vmem:[%s164_s3] sm:$0xff]  ;;  %v1137_v1 = vld [vmem:[%s164_s3 + $0x8] sm:$0xff]  ;;  %vm458_vm0 = vcmask 1040384   ;;  %s966_s16 = smov 127   ;;  %vm470_vm1 = vcmask 1046528  }
  0x4c   : > { %v1139_v2 = vld [vmem:[%s173_s19] sm:$0xff]  ;;  %v1141_v3 = vld [vmem:[%s173_s19 + $0x8] sm:$0xff]  ;;  %v495_v5 = vrot.slane %v1135_v0, 7  ;;  %v496_v6 = vrot.slane %v1137_v1, 7  ;;  %s967_s18 = smov 1   ;;  %s968_s22 = smov 2  }
  0x4d   : > { %v459_v4 = vrot.slane %v1139_v2, 7  ;;  %v460_v7 = vrot.slane %v1141_v3, 7  ;;  %v471_v10 = vrot.slane %v1139_v2, 1  ;;  %v472_v11 = vrot.slane %v1141_v3, 1  ;;  %s969_s29 = smov 126   ;;  %p198_p8 = scmp.lt.s32.totalorder %s1004_s13, 1 }
  0x4e   : > { %572 = vrot.lane.b32.xlu1 %v495_v5, %s966_s16  ;;  %v497_v9 = vsel %vm458_vm0, %v495_v5, %v496_v6  ;;  %vm208_vm2 = vcmask 1042432   ;;  %vm216_vm3 = vcmask 1044480   ;;  %vm275_vm4 = vcmask 1045504  }
  0x4f   : > { %543 = vrot.lane.b32.xlu0 %v459_v4, %s966_s16  ;;  %v461_v8 = vsel %vm458_vm0, %v459_v4, %v460_v7  ;;  %v473_v12 = vsel %vm470_vm1, %v471_v10, %v472_v11  ;;  %vm283_vm5 = vcmask 1041408   ;;  %vm528_vm6 = vcmask 120832   ;;  %s1358_s13 = smov (!%p198_p8, %s1004_s13), 1 }
  0x50   : > { %vm443_vm7 = vcmask 121856   ;;  %vm259_vm8 = vcmask 130048   ;;  %vm261_vm9 = vcmask 126976   ;;  %vm376_vm10 = vcmask 113664   ;;  %s765_s19 = sshll.u32 %s1358_s13, 3 }
  0x51   : > { %vm318_vm11 = vcmask 128000  }
  0x52   : > { %574 = vrot.lane.b32.xlu1 %v497_v9, %s966_s16 }
  0x53   : > { %545 = vrot.lane.b32.xlu0 %v461_v8, %s966_s16 }
  0x56   : > { %476 = vrot.lane.b32.xlu1 %v472_v11, %s966_s16 }
  0x57   : > { %474 = vrot.lane.b32.xlu0 %v473_v12, %s966_s16 }
  0x5a   : > { %401 = vrot.lane.b32.xlu1 %v1141_v3, %s966_s16 }
  0x5b   : > { %399 = vrot.lane.b32.xlu0 %v1139_v2, %s966_s16 }
  0x5e   : > { %464 = vrot.lane.b32.xlu1 %v461_v8, %s967_s18 }
  0x5f   : > { %462 = vrot.lane.b32.xlu0 %v459_v4, %s967_s18 }
  0x62   : > { %500 = vrot.lane.b32.xlu1 %v497_v9, %s967_s18 }
  0x63   : > { %498 = vrot.lane.b32.xlu0 %v495_v5, %s967_s18 }
  0x66   : > { %393 = vrot.lane.b32.xlu1 %v1141_v3, %s967_s18 }
  0x67   : > { %391 = vrot.lane.b32.xlu0 %v1139_v2, %s967_s18 }
  0x6a   : > { %419 = vrot.lane.b32.xlu1 %v1137_v1, %s967_s18 }
  0x6b   : > { %417 = vrot.lane.b32.xlu0 %v1135_v0, %s967_s18 }
  0x6e   : > { %342 = vrot.lane.b32.xlu1 %v1141_v3, %s968_s22 }
  0x6f   : > { %340 = vrot.lane.b32.xlu0 %v1139_v2, %s968_s22 }
  0x72   : > { %553 = vrot.lane.b32.xlu1 %v472_v11, %s967_s18 }
  0x73   : > { %551 = vrot.lane.b32.xlu0 %v473_v12, %s967_s18 }
  0xc0   : > { %v573_v14 = vpop.permute.xlu1 %572 }
  0xc1   : > { %v544_v13 = vpop.permute.xlu0 %543  ;;  %v578_v19 = vadd.f32 %v573_v14, %v1135_v0 }
  0xc2   : > { %v580_v18 = vadd.f32 %v544_v13, %v1139_v2  ;;  %v1200_v39 = vmul.f32 %v544_v13, %v1135_v0 }
  0xc4   : > { %v575_v16 = vpop.permute.xlu1 %574  ;;  %v1186_v26 = vmul.f32 %v580_v18, %v578_v19  ;;  %v613_v48 = vrot.slane %v1200_v39, 1 }
  0xc5   : > { %v546_v15 = vpop.permute.xlu0 %545  ;;  %v579_v20 = vadd.f32 %v575_v16, %v1137_v1 }
  0xc6   : > { %v581_v17 = vadd.f32 %v546_v15, %v1141_v3  ;;  %v626_v33 = vrot.slane %v1186_v26, 1  ;;  %v1194_v34 = vmul.f32 %v546_v15, %v1137_v1 }
  0xc8   : > { %v1182_v21 = vmul.f32 %v581_v17, %v579_v20  ;;  %v477_v23 = vpop.permute.xlu1 %476  ;;  %v614_v43 = vrot.slane %v1194_v34, 1 }
  0xc9   : > { %v475_v22 = vpop.permute.xlu0 %474  ;;  %v481_v25 = vmul.f32 %v477_v23, %v1137_v1  ;;  %v1239_v23 = vrot.slane %v1139_v2, 5 }
  0xca   : > { %v480_v24 = vmul.f32 %v475_v22, %v1135_v0  ;;  %v627_v29 = vrot.slane %v1182_v21, 1  ;;  %v615_v53 = vsel %vm470_vm1, %v613_v48, %v614_v43 }
  0xcb   : > { %v485_v28 = vrot.slane %v481_v25, 7 }
  0xcc   : > { %v484_v27 = vrot.slane %v480_v24, 7  ;;  %v402_v31 = vpop.permute.xlu1 %401  ;;  %v628_v37 = vsel %vm470_vm1, %v626_v33, %v627_v29 }
  0xcd   : > { %v400_v30 = vpop.permute.xlu0 %399  ;;  %v406_v40 = vmul.f32 %v402_v31, %v1137_v1 }
  0xce   : > { %487 = vrot.lane.b32.xlu0 %v484_v27, %s967_s18  ;;  %v486_v32 = vsel %vm458_vm0, %v484_v27, %v485_v28  ;;  %v405_v38 = vmul.f32 %v400_v30, %v1135_v0  ;;  %v210_v27 = vrot.slane %v1141_v3, 5  ;;  %v235_v28 = vrot.slane %v1135_v0, 5 }
  0xcf   : > { %489 = vrot.lane.b32.xlu1 %v486_v32, %s967_s18 }
  0xd0   : > { %v465_v36 = vpop.permute.xlu1 %464 }
  0xd1   : > { %v463_v35 = vpop.permute.xlu0 %462  ;;  %v507_v42 = vadd.f32 %v465_v36, %v1141_v3  ;;  %v469_v14 = vmul.f32 %v465_v36, %v1137_v1 }
  0xd2   : > { %629 = vrot.lane.b32.xlu0 %v628_v37, %s967_s18  ;;  %v506_v41 = vadd.f32 %v463_v35, %v1139_v2  ;;  %v468_v13 = vmul.f32 %v463_v35, %v1135_v0 }
  0xd3   : > { %631 = vrot.lane.b32.xlu1 %v627_v29, %s967_s18  ;;  %v236_v29 = vrot.slane %v1137_v1, 5 }
  0xd4   : > { %v501_v45 = vpop.permute.xlu1 %500 }
  0xd5   : > { %v499_v44 = vpop.permute.xlu0 %498  ;;  %v505_v47 = vadd.f32 %v501_v45, %v1137_v1  ;;  %v218_v45 = vrot.slane %v1141_v3, 3 }
  0xd6   : > { %v504_v46 = vadd.f32 %v499_v44, %v1135_v0  ;;  %409 = vrot.lane.b32.xlu0 %v405_v38, %s967_s18  ;;  %v217_v44 = vrot.slane %v1139_v2, 3 }
  0xd7   : > { %411 = vrot.lane.b32.xlu1 %v406_v40, %s967_s18  ;;  %v509_v50 = vmul.f32 %v507_v42, %v505_v47  ;;  %v1248_v40 = vsel %vm208_vm2, %v1239_v23, %v210_v27 }
  0xd8   : > { %v508_v49 = vmul.f32 %v506_v41, %v504_v46  ;;  %v394_v52 = vpop.permute.xlu1 %393  ;;  %v237_v41 = vsel %vm208_vm2, %v235_v28, %v236_v29 }
  0xd9   : > { %v392_v51 = vpop.permute.xlu0 %391  ;;  %v426_v55 = vadd.f32 %v394_v52, %v1141_v3  ;;  %v398_v36 = vmul.f32 %v394_v52, %v1137_v1 }
  0xda   : > { %616 = vrot.lane.b32.xlu0 %v615_v53, %s967_s18  ;;  %v425_v54 = vadd.f32 %v392_v51, %v1139_v2  ;;  %834 = vrcp.f32 %v508_v49  ;;  %v397_v33 = vmul.f32 %v392_v51, %v1135_v0  ;;  %v240_v49 = vadd.f32 %v235_v28, %v1135_v0 }
  0xdb   : > { %618 = vrot.lane.b32.xlu1 %v614_v43, %s967_s18  ;;  %836 = vrcp.f32 %v509_v50  ;;  %v242_v50 = vadd.f32 %v1239_v23, %v1139_v2  ;;  %v241_v53 = vadd.f32 %v237_v41, %v1137_v1 }
  0xdc   : > { %v420_v57 = vpop.permute.xlu1 %419 }
  0xdd   : > { %v418_v56 = vpop.permute.xlu0 %417  ;;  %v424_v59 = vadd.f32 %v420_v57, %v1137_v1 }
  0xde   : > { %v423_v58 = vadd.f32 %v418_v56, %v1135_v0  ;;  %332 = vrot.lane.b32.xlu0 %v1139_v2, %s969_s29 }
  0xdf   : > { %334 = vrot.lane.b32.xlu1 %v1141_v3, %s969_s29  ;;  %v428_v61 = vmul.f32 %v426_v55, %v424_v59 }
  0xe0   : > { %v427_v60 = vmul.f32 %v425_v54, %v423_v58  ;;  %v343_v63 = vpop.permute.xlu1 %342  ;;  %v243_v54 = vadd.f32 %v1248_v40, %v1141_v3 }
  0xe1   : > { %v341_v62 = vpop.permute.xlu0 %340  ;;  %v347_v5 = vmul.f32 %v343_v63, %v1137_v1  ;;  %v244_v63 = vmul.f32 %v242_v50, %v240_v49 }
  0xe2   : > { %v346_v4 = vmul.f32 %v341_v62, %v1135_v0  ;;  %358 = vrot.lane.b32.xlu0 %v1135_v0, %s969_s29  ;;  %838 = vrcp.f32 %v427_v60  ;;  %v219_v60 = vsel %vm216_vm3, %v217_v44, %v218_v45 }
  0xe3   : > { %360 = vrot.lane.b32.xlu1 %v1137_v1, %s969_s29  ;;  %840 = vrcp.f32 %v428_v61 }
  0xe4   : > { %v554_v7 = vpop.permute.xlu1 %553  ;;  %v835_v18 = vpop.eup %834 }
  0xe5   : > { %v552_v6 = vpop.permute.xlu0 %551  ;;  %v1229_v9 = vmul.f32 %v554_v7, %v1137_v1  ;;  %v837_v20 = vpop.eup %836 }
  0xe6   : > { %v1226_v8 = vmul.f32 %v552_v6, %v1135_v0  ;;  %350 = vrot.lane.b32.xlu0 %v346_v4, %s969_s29 }
  0xe7   : > { %352 = vrot.lane.b32.xlu1 %v347_v5, %s969_s29  ;;  %v562_v11 = vrot.slane %v1229_v9, 7  ;;  %v245_v5 = vmul.f32 %v243_v54, %v241_v53 }
  0xe8   : > { %v561_v10 = vrot.slane %v1226_v8, 7 }
  0xea   : > { %564 = vrot.lane.b32.xlu0 %v561_v10, %s966_s16  ;;  %v563_v12 = vsel %vm458_vm0, %v561_v10, %v562_v11  ;;  %v223_v10 = vmul.f32 %v218_v45, %v1137_v1  ;;  %v276_v11 = vrot.slane %v1139_v2, 2 }
  0xeb   : > { %566 = vrot.lane.b32.xlu1 %v563_v12, %s966_s16 }
  0xec   : > { %v839_v46 = vpop.eup %838 }
  0xed   : > { %v841_v51 = vpop.eup %840 }
 0x140   : > { %v488_v15 = vpop.permute.xlu0 %487 }
 0x141   : > { %v493_v16 = vsub.f32 %v468_v13, %v488_v15  ;;  %v490_v17 = vpop.permute.xlu1 %489 }
 0x142   : > { %v494_v19 = vsub.f32 %v469_v14, %v490_v17  ;;  %v301_v14 = vrot.slane %v1137_v1, 2 }
 0x143   : > { %v511_v22 = vmul.f32 %v835_v18, %v493_v16  ;;  %v227_v18 = vrot.slane %v223_v10, 5 }
 0x144   : > { %v513_v24 = vmul.f32 %v837_v20, %v494_v19  ;;  %v630_v25 = vpop.permute.xlu0 %629 }
 0x145   : > { %v514_v30 = vand.u32 2147483647, %v511_v22  ;;  %842 = vrcp.f32 %v630_v25  ;;  %v632_v31 = vpop.permute.xlu1 %631 }
 0x146   : > { %v515_v32 = vand.u32 2147483647, %v513_v24  ;;  %844 = vrcp.f32 %v632_v31  ;;  %v284_v31 = vrot.slane %v1139_v2, 6 }
 0x147   : > { %v518_v35 = vrot.slane %v514_v30, 1  ;;  %846 = vrcp.f32 %v1186_v26  ;;  %v300_v26 = vrot.slane %v1135_v0, 2  ;;  %v214_v30 = vmul.f32 %v1239_v23, %v1135_v0 }
 0x148   : > { %v519_v37 = vrot.slane %v515_v32, 1  ;;  %v410_v38 = vpop.permute.xlu0 %409  ;;  %848 = vrcp.f32 %v244_v63  ;;  %v285_v32 = vrot.slane %v1141_v3, 6 }
 0x149   : > { %v415_v42 = vsub.f32 %v397_v33, %v410_v38  ;;  %v412_v43 = vpop.permute.xlu1 %411  ;;  %850 = vrcp.f32 %v245_v5  ;;  %v302_v27 = vsel %vm275_vm4, %v300_v26, %v301_v14  ;;  %v306_v33 = vadd.f32 %v301_v14, %v1137_v1 }
 0x14a   : > { %v416_v47 = vsub.f32 %v398_v36, %v412_v43  ;;  %v520_v48 = vsel %vm470_vm1, %v518_v35, %v519_v37  ;;  %852 = vrcp.f32 %v1182_v21  ;;  %v305_v23 = vadd.f32 %v302_v27, %v1135_v0 }
 0x14b   : > { %v430_v52 = vmul.f32 %v839_v46, %v415_v42  ;;  %v286_v46 = vsel %vm283_vm5, %v284_v31, %v285_v32 }
 0x14c   : > { %v432_v55 = vmul.f32 %v841_v51, %v416_v47  ;;  %v617_v56 = vpop.permute.xlu0 %616 }
 0x14d   : > { %v433_v57 = vand.u32 2147483647, %v430_v52  ;;  %v622_v58 = vsub.f32 %v1226_v8, %v617_v56  ;;  %v619_v59 = vpop.permute.xlu1 %618  ;;  %v222_v8 = vmul.f32 %v219_v60, %v1135_v0  ;;  %v290_v56 = vmul.f32 %v286_v46, %v1137_v1 }
 0x14e   : > { %v434_v61 = vand.u32 2147483647, %v432_v55  ;;  %v623_v62 = vsub.f32 %v1229_v9, %v619_v59  ;;  %v1272_v9 = vrot.slane %v1141_v3, 2  ;;  %v289_v55 = vmul.f32 %v284_v31, %v1135_v0 }
 0x14f   : > { %v843_v4 = vpop.eup %842  ;;  %437 = vrot.lane.b32.xlu0 %v433_v57, %s966_s16  ;;  %v226_v17 = vrot.slane %v222_v8, 5 }
 0x150   : > { %v845_v6 = vpop.eup %844  ;;  %439 = vrot.lane.b32.xlu1 %v434_v61, %s966_s16  ;;  %v1266_v7 = vpop.permute.xlu0 %332  ;;  %v636_v12 = vmul.f32 %v843_v4, %v622_v58  ;;  %v278_v19 = vsel %vm275_vm4, %v276_v11, %v1272_v9  ;;  %v308_v35 = vadd.f32 %v1272_v9, %v1141_v3  ;;  %v293_v63 = vrot.slane %v289_v55, 2 }
 0x151   : > { %v1274_v13 = vpop.permute.xlu1 %334  ;;  %v638_v15 = vmul.f32 %v845_v6, %v623_v62  ;;  %v366_v22 = vadd.f32 %v1266_v7, %v1139_v2  ;;  %v307_v38 = vadd.f32 %v278_v19, %v1139_v2  ;;  %v847_v41 = vpop.eup %846  ;;  %v228_v44 = vsel %vm208_vm2, %v226_v17, %v227_v18 }
 0x152   : > { %v639_v20 = vand.u32 2147483647, %v636_v12  ;;  %v367_v21 = vadd.f32 %v1274_v13, %v1141_v3  ;;  %v310_v47 = vmul.f32 %v308_v35, %v306_v33  ;;  %v849_v3 = vpop.eup %848  ;;  %v231_v49 = vsub.f32 %v214_v30, %v226_v17 }
 0x153   : > { %521 = vrot.lane.b32.xlu0 %v520_v48, %s966_s16  ;;  %v640_v28 = vand.u32 2147483647, %v638_v15  ;;  %v309_v51 = vmul.f32 %v307_v38, %v305_v23  ;;  %v851_v52 = vpop.eup %850  ;;  %v294_v4 = vrot.slane %v290_v56, 2  ;;  %v281_v11 = vmul.f32 %v278_v19, %v1135_v0 }
 0x154   : > { %523 = vrot.lane.b32.xlu1 %v519_v37, %s966_s16  ;;  %v359_v16 = vpop.permute.xlu0 %358  ;;  %v215_v37 = vmul.f32 %v1248_v40, %v1137_v1  ;;  %v853_v54 = vpop.eup %852  ;;  %v247_v59 = vmul.f32 %v849_v3, %v231_v49  ;;  %v282_v12 = vmul.f32 %v1272_v9, %v1137_v1 }
 0x155   : > { %v364_v24 = vadd.f32 %v359_v16, %v1135_v0  ;;  %v361_v25 = vpop.permute.xlu1 %360  ;;  %v295_v26 = vsel %vm275_vm4, %v293_v63, %v294_v4 }
 0x156   : > { %v365_v29 = vadd.f32 %v361_v25, %v1137_v1  ;;  %v232_v50 = vsub.f32 %v215_v37, %v228_v44  ;;  %v250_v8 = vand.u32 2147483647, %v247_v59  ;;  %v299_v19 = vsub.f32 %v282_v12, %v294_v4 }
 0x157   : > { %643 = vrot.lane.b32.xlu0 %v639_v20, %s966_s16  ;;  %v368_v42 = vmul.f32 %v366_v22, %v364_v24 }
 0x158   : > { %645 = vrot.lane.b32.xlu1 %v640_v28, %s966_s16  ;;  %v351_v36 = vpop.permute.xlu0 %350  ;;  %v369_v45 = vmul.f32 %v367_v21, %v365_v29  ;;  %v249_v60 = vmul.f32 %v851_v52, %v232_v50  ;;  %v254_v20 = vrot.slane %v250_v8, 3 }
 0x159   : > { %v353_v43 = vpop.permute.xlu1 %352  ;;  %854 = vrcp.f32 %v368_v42 }
 0x15a   : > { %856 = vrcp.f32 %v369_v45  ;;  %v251_v10 = vand.u32 2147483647, %v249_v60 }
 0x15b   : > { %858 = vrcp.f32 %v310_v47 }
 0x15c   : > { %v565_v48 = vpop.permute.xlu0 %564  ;;  %860 = vrcp.f32 %v309_v51  ;;  %v255_v22 = vrot.slane %v251_v10, 3 }
 0x15d   : > { %v570_v40 = vsub.f32 %v1200_v39, %v565_v48  ;;  %v567_v53 = vpop.permute.xlu1 %566  ;;  %v338_v39 = vmul.f32 %v1266_v7, %v1135_v0  ;;  %v298_v0 = vsub.f32 %v281_v11, %v295_v26 }
 0x15e   : > { %v571_v2 = vsub.f32 %v1194_v34, %v567_v53  ;;  %v339_v34 = vmul.f32 %v1274_v13, %v1137_v1  ;;  %v256_v28 = vsel %vm216_vm3, %v254_v20, %v255_v22  ;;  %v262_v33 = vsel %vm261_vm9, %v255_v22, 0.0 }
 0x15f   : > { %v585_v57 = vmul.f32 %v847_v41, %v570_v40  ;;  %v356_v16 = vsub.f32 %v338_v39, %v351_v36  ;;  %v260_v32 = vsel %vm259_vm8, %v256_v28, 0.0 }
 0x160   : > { %v587_v58 = vmul.f32 %v853_v54, %v571_v2  ;;  %v357_v13 = vsub.f32 %v339_v34, %v353_v43  ;;  %v263_v37 = vadd.f32 %v262_v33, %v260_v32 }
 0x161   : > { %v588_v61 = vand.u32 2147483647, %v585_v57 }
 0x162   : > { %v589_v62 = vand.u32 2147483647, %v587_v58 }
 0x163   : > { %v592_v5 = vrot.slane %v588_v61, 1  ;;  %v855_v15 = vpop.eup %854 }
 0x164   : > { %v593_v6 = vrot.slane %v589_v62, 1  ;;  %v857_v18 = vpop.eup %856  ;;  %v371_v1 = vmul.f32 %v855_v15, %v356_v16 }
 0x165   : > { %v859_v25 = vpop.eup %858  ;;  %v373_v9 = vmul.f32 %v857_v18, %v357_v13 }
 0x166   : > { %v594_v14 = vsel %vm470_vm1, %v592_v5, %v593_v6  ;;  %v598_v7 = vsel %vm528_vm6, %v593_v6, 0.0  ;;  %v861_v27 = vpop.eup %860  ;;  %v314_v29 = vmul.f32 %v859_v25, %v299_v19  ;;  %v374_v30 = vand.u32 2147483647, %v371_v1 }
 0x167   : > { %v597_v17 = vsel %vm443_vm7, %v594_v14, 0.0  ;;  %v312_v21 = vmul.f32 %v861_v27, %v298_v0  ;;  %v375_v31 = vand.u32 2147483647, %v373_v9 }
 0x168   : > { %v599_v24 = vadd.f32 %v598_v7, %v597_v17  ;;  %v316_v36 = vand.u32 2147483647, %v314_v29  ;;  %v377_v23 = vsel %vm376_vm10, %v374_v30, 0.0 }
 0x169   : > { %v315_v35 = vand.u32 2147483647, %v312_v21  ;;  %v378_v38 = vsel %vm376_vm10, %v375_v31, 0.0 }
 0x16a   : > { %v319_v42 = vsel %vm318_vm11, %v316_v36, 0.0  ;;  %v379_v43 = vadd.f32 %v378_v38, %v377_v23 }
 0x16b   : > { %v317_v41 = vsel %vm259_vm8, %v315_v35, 0.0 }
 0x16c   : > { %v320_v44 = vadd.f32 %v319_v42, %v317_v41 }
 0x176   : > { %264 = vadd.xlane.f32.xlu0 %v263_v37 }
 0x17a   : > { %380 = vadd.xlane.f32.xlu0 %v379_v43 }
 0x17c   : > { %321 = vadd.xlane.f32.xlu1 %v320_v44 }
 0x1c1   : > { %v438_v45 = vpop.permute.xlu0 %437 }
 0x1c2   : > { %v444_v46 = vsel %vm443_vm7, %v438_v45, 0.0  ;;  %v440_v47 = vpop.permute.xlu1 %439 }
 0x1c3   : > { %v445_v3 = vsel %vm443_vm7, %v440_v47, 0.0 }
 0x1c4   : > { %v446_v48 = vadd.f32 %v445_v3, %v444_v46 }
 0x1c5   : > { %v522_v49 = vpop.permute.xlu0 %521 }
 0x1c6   : > { %v527_v50 = vsel %vm443_vm7, %v522_v49, 0.0  ;;  %v524_v51 = vpop.permute.xlu1 %523  ;;  %447 = vadd.xlane.f32.xlu0 %v446_v48 }
 0x1c7   : > { %v529_v52 = vsel %vm528_vm6, %v524_v51, 0.0 }
 0x1c8   : > { %v530_v40 = vadd.f32 %v529_v52, %v527_v50 }
 0x1c9   : > { %v644_v53 = vpop.permute.xlu0 %643 }
 0x1ca   : > { %v649_v54 = vsel %vm443_vm7, %v644_v53, 0.0  ;;  %v646_v2 = vpop.permute.xlu1 %645  ;;  %531 = vadd.xlane.f32.xlu1 %v530_v40  ;;  %600 = vadd.xlane.f32.xlu0 %v599_v24 }
 0x1cb   : > { %v650_v55 = vsel %vm528_vm6, %v646_v2, 0.0 }
 0x1cc   : > { %v651_v56 = vadd.f32 %v650_v55, %v649_v54 }
 0x1ce   : > { %652 = vadd.xlane.f32.xlu1 %v651_v56 }
 0x203   : > { %v265_v57 = vpop.xlane.xlu0 %264 }
 0x204   : > { %v266_v58 = vrot.slane %v265_v57, 4 }
 0x206   : > { %v267_v59 = vadd.f32 %v266_v58, %v265_v57 }
 0x207   : > { %v381_v60 = vpop.xlane.xlu0 %380 }
 0x208   : > { %v268_v61 = vrot.slane %v267_v59, 2  ;;  %v382_v62 = vrot.slane %v381_v60, 4 }
 0x209   : > { %v322_v63 = vpop.xlane.xlu1 %321 }
 0x20a   : > { %v323_v4 = vrot.slane %v322_v63, 4  ;;  %v383_v39 = vadd.f32 %v382_v62, %v381_v60  ;;  %v269_v34 = vadd.f32 %v268_v61, %v267_v59 }
 0x20c   : > { %v324_v5 = vadd.f32 %v323_v4, %v322_v63  ;;  %v384_v6 = vrot.slane %v383_v39, 2  ;;  %v270_v8 = vrot.slane %v269_v34, 1 }
 0x20e   : > { %v325_v10 = vrot.slane %v324_v5, 2  ;;  %v271_v11 = vadd.f32 %v270_v8, %v269_v34  ;;  %v385_v12 = vadd.f32 %v384_v6, %v383_v39 }
 0x210   : > { %770 = vpush %v271_v11  ;;  %v326_v26 = vadd.f32 %v325_v10, %v324_v5  ;;  %v386_v14 = vrot.slane %v385_v12, 1 }
 0x212   : > { %v327_v7 = vrot.slane %v326_v26, 1  ;;  %v387_v15 = vadd.f32 %v386_v14, %v385_v12 }
 0x214   : > { %v328_v16 = vadd.f32 %v327_v7, %v326_v26 }
 0x216   : > { %772 = vpush %v328_v16 }
 0x217   : > { %774 = vpush %v387_v15 }
 0x241   : > { %s771_s30 = spop %770 }
 0x242   : > { %s273_s24 = smul.f32 0.0048076925, %s771_s30  ;;  %s201_s30 = scalar_lea.vmem %s1346_s2, %s765_s19 }
 0x247   : > { %s773_s4 = spop %772 }
 0x248   : > { %s330_s26 = smul.f32 0.004464286, %s773_s4  ;;  %s775_s12 = spop %774 }
 0x249   : > { %s389_s28 = smul.f32 0.004464286, %s775_s12 }
 0x24a   : > { %s331_s21 = sadd.f32 %s330_s26, %s273_s24 }
 0x24c   : > { %s390_s20 = sadd.f32 %s389_s28, %s331_s21 }
 0x253   : > { %v448_v13 = vpop.xlane.xlu0 %447 }
 0x254   : > { %v449_v17 = vrot.slane %v448_v13, 4 }
 0x256   : > { %v450_v18 = vadd.f32 %v449_v17, %v448_v13 }
 0x257   : > { %v532_v20 = vpop.xlane.xlu1 %531  ;;  %v601_v22 = vpop.xlane.xlu0 %600 }
 0x258   : > { %v451_v24 = vrot.slane %v450_v18, 2  ;;  %v533_v25 = vrot.slane %v532_v20, 4  ;;  %v602_v0 = vrot.slane %v601_v22, 4 }
 0x25a   : > { %v534_v19 = vadd.f32 %v533_v25, %v532_v20  ;;  %v603_v27 = vadd.f32 %v602_v0, %v601_v22  ;;  %v452_v1 = vadd.f32 %v451_v24, %v450_v18 }
 0x25b   : > { %v653_v9 = vpop.xlane.xlu1 %652 }
 0x25c   : > { %v535_v28 = vrot.slane %v534_v19, 2  ;;  %v604_v21 = vrot.slane %v603_v27, 2  ;;  %v654_v29 = vrot.slane %v653_v9, 4  ;;  %v453_v30 = vrot.slane %v452_v1, 1 }
 0x25e   : > { %v605_v31 = vadd.f32 %v604_v21, %v603_v27  ;;  %v655_v32 = vadd.f32 %v654_v29, %v653_v9  ;;  %v454_v33 = vadd.f32 %v453_v30, %v452_v1  ;;  %v536_v35 = vadd.f32 %v535_v28, %v534_v19 }
 0x260   : > { %v656_v36 = vrot.slane %v655_v32, 2  ;;  %776 = vpush %v454_v33  ;;  %v537_v37 = vrot.slane %v536_v35, 1  ;;  %v606_v23 = vrot.slane %v605_v31, 1 }
 0x262   : > { %v657_v38 = vadd.f32 %v656_v36, %v655_v32  ;;  %v538_v41 = vadd.f32 %v537_v37, %v536_v35  ;;  %v607_v42 = vadd.f32 %v606_v23, %v605_v31 }
 0x264   : > { %778 = vpush %v538_v41  ;;  %v658_v43 = vrot.slane %v657_v38, 1 }
 0x265   : > { %780 = vpush %v607_v42 }
 0x266   : > { %v659_v44 = vadd.f32 %v658_v43, %v657_v38 }
 0x268   : > { %782 = vpush %v659_v44 }
 0x291   : > { %s777_s5 = spop %776 }
 0x292   : > { %s456_s6 = smul.f32 0.004166667, %s777_s5 }
 0x294   : > { %s457_s8 = sadd.f32 %s456_s6, %s390_s20 }
 0x295   : > { %s779_s7 = spop %778 }
 0x296   : > { %s540_s9 = smul.f32 0.0044444446, %s779_s7  ;;  %s781_s15 = spop %780 }
 0x297   : > { %s609_s27 = smul.f32 0.0044444446, %s781_s15 }
 0x298   : > { %s541_s23 = sadd.f32 %s540_s9, %s457_s8 }
 0x299   : > { %s783_s25 = spop %782 }
 0x29a   : > { %s542_s3 = sadd.f32 %s541_s23, %s540_s9  ;;  %s661_s18 = smul.f32 0.0044444446, %s783_s25 }
 0x29c   : > { %s610_s16 = sadd.f32 %s609_s27, %s542_s3 }
 0x29e   : > { %s662_s4 = sadd.f32 %s661_s18, %s610_s16 }
 0x2a0   : > { %v663_v45 = vstv %s662_s4 }
 0x2a1   : > { %664 = vst [vmem:[%s201_s30] sm:$0xff] %v663_v45 }
 0x2a2 PF: > { %p15_p11 = scmp.ge.s32.totalorder %s1007_s14, 4   ;;  %s1353_s9 = smov %s952_s10 }
 0x2a3   : > { %s1354_s10 = smov %s956_s11  ;;  %s1355_s11 = smov %s1017_s17 }
 0x2a4   : > { %s1356_s12 = smov %s1007_s14  ;;  %17 = sbr.rel (!%p15_p11) target bundleno = 5 (0x5), region = 81 }
 0x2ab   :  { %684 = vsyncpa [#allocation3], 1 }
 0x2ac   :  { %686 = vsyncpa [#allocation3 + $0x1], 1 }
 0x2ad   :  { %687 = vsyncpa [#allocation5], 1 }
 0x2ae   :  { %689 = vsyncpa [#allocation5 + $0x1], 1 }

</bundles_post_ra>
